<compile_context>
chip_gen: v7x
topology: tpu7x:2x2x1
jax: 0.10.0
libtpu: 0.0.40
codegen_flags: <defaults>
</compile_context>

<pallas_src>
import jax
import jax.numpy as jnp
from jax import lax
from jax.experimental import pallas as pl
from jax.experimental.pallas import tpu as pltpu


def policy_kernel(x_ref, w_ref, b_ref, o_ref):
    # x_ref: (TB, D) VMEM tile, w_ref: (1, D) VMEM (resident across the grid),
    # b_ref: (1,) SMEM scalar, o_ref: (1, TB) VMEM (lane-dense output tile).
    #
    # Transposed-RHS contraction: contract dim 1 of w with dim 1 of x.
    # No explicit x.T -> no materialized (D, TB) copy / XLU transpose.
    z = lax.dot_general(
        w_ref[...], x_ref[...],
        dimension_numbers=(((1,), (1,)), ((), ())),
        preferred_element_type=jnp.float32,
    )                                                   # (1, TB) f32
    z = z + b_ref[0]                                    # scalar bias from SMEM
    # Exact sigmoid: EUP has huge slack in this DMA-bound regime.
    o_ref[...] = jax.nn.sigmoid(z).astype(o_ref.dtype)  # (1, TB), unmasked vst


def _round_up(n, m):
    return (n + m - 1) // m * m


def policy_forward(x, w, b, *, tb=None):
    """x: (B, D) f32, w: (1, D) f32 (PyTorch layout), b: (1,) f32 -> (B, 1) f32."""
    B, D = x.shape
    assert w.shape == (1, D), w.shape
    assert b.shape == (1,), b.shape

    # Generation-aware VMEM capacity (v7x: 64 MiB/TC, v5e/v6e: 128 MiB).
    try:
        vmem_cap = pltpu.get_tpu_info().vmem_capacity_bytes
    except Exception:  # conservative fallback if the query is unavailable
        vmem_cap = 64 * 1024 * 1024

    itemsize = jnp.dtype(x.dtype).itemsize
    auto_tb = tb is None
    if auto_tb:
        # Byte budget per x block: >= ~2 MiB to amortize the ~0.35 us per-step
        # overhead (>=85% of HBM roofline), <= min(16 MiB, VMEM/6) so the
        # double-buffered input stays well under VMEM on all generations.
        block_budget = max(2 << 20, min(16 << 20, vmem_cap // 6))
        tb = block_budget // (D * itemsize)
    # Multiple of 128 keeps the (1, tb) output store fully lane-dense/unmasked.
    tb = max(128, (tb // 128) * 128)
    tb = min(tb, _round_up(B, 128))          # don't over-pad tiny batches

    nt = -(-B // tb)
    if auto_tb and nt > 1 and nt % 2 == 1:
        # v7x megacore: prefer an even tile count so both TensorCores get
        # equal work (no-op on single-TC v5e/v6e).
        tb2 = max(128, _round_up(-(-B // (nt + 1)), 128))
        if (-(-B // tb2)) % 2 == 0:
            tb = tb2
            nt = -(-B // tb)

    bp = nt * tb
    if bp != B:
        x = jnp.pad(x, ((0, bp - B), (0, 0)))   # tail tile zero-padded

    # vmem_limit: ~40 MiB on 64 MiB parts (headroom for compiler scratch),
    # 64 MiB on 128 MiB parts; always >> 2x block + residual weight/output.
    vmem_limit = int(min(vmem_cap * 5 // 8, 64 << 20))

    out = pl.pallas_call(
        policy_kernel,
        out_shape=jax.ShapeDtypeStruct((1, bp), jnp.float32),
        grid_spec=pltpu.PrefetchScalarGridSpec(
            num_scalar_prefetch=0,
            grid=(nt,),
            in_specs=[
                # x: one (TB, D) batch tile per grid step (pipelined DMA).
                pl.BlockSpec((tb, D), lambda i: (i, 0)),
                # w: constant index_map -> stays VMEM-resident across steps.
                pl.BlockSpec((1, D), lambda i: (0, 0)),
                # bias: single scalar in SMEM (no padded VMEM tile).
                pl.BlockSpec(memory_space=pltpu.MemorySpace.SMEM),
            ],
            # Lane-dense flat output: batch tile i lands at lanes [i*tb, (i+1)*tb).
            out_specs=pl.BlockSpec((1, tb), lambda i: (0, i)),
        ),
        compiler_params=pltpu.CompilerParams(
            # Independent batch tiles -> shard across both TensorCores on v7x.
            dimension_semantics=("parallel",),
            vmem_limit_bytes=vmem_limit,
        ),
    )(x, w, b)

    return out[0, :B, None]                 # (B, 1)


if __name__ == "__main__":
    key = jax.random.PRNGKey(0)
    kx, kw, kb, kx2 = jax.random.split(key, 4)

    # (a) Small shape, exact module __init__: weight = bias = 0 => sigmoid(0) = 0.5.
    batch, input_size = 8, 32
    x = jax.random.normal(kx, (batch, input_size), dtype=jnp.float32)
    w0 = jnp.zeros((1, input_size), dtype=jnp.float32)   # PyTorch (out, in)
    b0 = jnp.zeros((1,), dtype=jnp.float32)
    out0 = jax.block_until_ready(policy_forward(x, w0, b0))
    assert out0.shape == (batch, 1)
    assert jnp.allclose(out0, 0.5, atol=1e-6), float(jnp.max(jnp.abs(out0 - 0.5)))

    # (b) Non-trivial params, multi-tile grid (forced tb=128) to exercise
    #     tiling, tail-padding, and the lane-dense output path.
    batch2, d2 = 300, 128
    x2 = jax.random.normal(kx2, (batch2, d2), dtype=jnp.float32)
    w1 = 0.1 * jax.random.normal(kw, (1, d2), dtype=jnp.float32)
    b1 = 0.1 * jax.random.normal(kb, (1,), dtype=jnp.float32)
    out1 = jax.block_until_ready(policy_forward(x2, w1, b1, tb=128))
    ref1 = jax.nn.sigmoid(x2 @ w1.T + b1)
    assert out1.shape == ref1.shape == (batch2, 1)
    assert jnp.allclose(out1, ref1, atol=1e-5, rtol=1e-5), (
        float(jnp.max(jnp.abs(out1 - ref1))))

    print("KERNEL_OK")
</pallas_src>

<mosaic_0001>
module attributes {stable_mosaic.version = 11 : i64} {
  func.func @policy_kernel(%arg0: i32, %arg1: memref<128x32xf32, #tpu.memory_space<vmem>>, %arg2: memref<1x32xf32, #tpu.memory_space<vmem>>, %arg3: memref<1xf32, #tpu.memory_space<smem>>, %arg4: memref<1x128xf32, #tpu.memory_space<vmem>>) attributes {dimension_semantics = [#tpu.dimension_semantics<parallel>], iteration_bounds = array<i64: 1>, scalar_prefetch = 0 : i64, scratch_operands = 0 : i64, tpu.core_type = #tpu.core_type<tc>, window_params = [{transform_indices = @transform_0, window_bounds = array<i64: 128, 32>}, {pipeline_mode = #tpu.pipeline_mode<synchronous>, transform_indices = @transform_1, window_bounds = array<i64: 1, 32>}, {transform_indices = @transform_2, window_bounds = array<i64: 1>}, {transform_indices = @transform_3, window_bounds = array<i64: 1, 128>}]} {
    %c0 = arith.constant 0 : index
    %c0_0 = arith.constant 0 : index
    %0 = vector.load %arg2[%c0, %c0_0] : memref<1x32xf32, #tpu.memory_space<vmem>>, vector<1x32xf32>
    %c0_1 = arith.constant 0 : index
    %c0_2 = arith.constant 0 : index
    %1 = vector.load %arg1[%c0_1, %c0_2] : memref<128x32xf32, #tpu.memory_space<vmem>>, vector<128x32xf32>
    %cst = arith.constant dense<0.000000e+00> : vector<1x128xf32>
    %2 = tpu.matmul %0, %1, %cst {dimension_numbers = #tpu.dot_dimension_numbers<[1], [1], [0], [0], [0, 0, 1, 0], [], []>} : vector<1x32xf32>, vector<128x32xf32>, vector<1x128xf32> -> vector<1x128xf32>
    %c0_3 = arith.constant 0 : index
    %3 = memref.load %arg3[%c0_3] : memref<1xf32, #tpu.memory_space<smem>>
    %4 = vector.broadcast %3 : f32 to vector<1x128xf32>
    %5 = arith.addf %2, %4 : vector<1x128xf32>
    %6 = arith.negf %5 : vector<1x128xf32>
    %7 = math.exp %6 : vector<1x128xf32>
    %cst_4 = arith.constant 1.000000e+00 : f32
    %8 = vector.broadcast %cst_4 : f32 to vector<1x128xf32>
    %9 = arith.addf %8, %7 : vector<1x128xf32>
    %10 = arith.divf %8, %9 : vector<1x128xf32>
    %c0_5 = arith.constant 0 : index
    %c0_6 = arith.constant 0 : index
    %11 = vector.load %arg4[%c0_5, %c0_6] : memref<1x128xf32, #tpu.memory_space<vmem>>, vector<1x128xf32>
    tpu.vector_store %arg4[%c0_5, %c0_6], %10 {strides = array<i32>} : memref<1x128xf32, #tpu.memory_space<vmem>>, vector<1x128xf32>,
    return
  }
  func.func @transform_0(%arg0: i32) -> (i32, i32) {
    %c0_i32 = arith.constant 0 : i32
    %c0_i32_0 = arith.constant 0 : i32
    return %arg0, %c0_i32 : i32, i32
  }
  func.func @transform_1(%arg0: i32) -> (i32, i32) {
    %c0_i32 = arith.constant 0 : i32
    %c0_i32_0 = arith.constant 0 : i32
    %c0_i32_1 = arith.constant 0 : i32
    return %c0_i32, %c0_i32_0 : i32, i32
  }
  func.func @transform_2(%arg0: i32) -> i32 {
    %c0_i32 = arith.constant 0 : i32
    %c0_i32_0 = arith.constant 0 : i32
    return %c0_i32 : i32
  }
  func.func @transform_3(%arg0: i32) -> (i32, i32) {
    %c0_i32 = arith.constant 0 : i32
    %c0_i32_0 = arith.constant 0 : i32
    return %c0_i32, %arg0 : i32, i32
  }
}

</mosaic_0001>

<bundles_post_ra>
// kernel: tpu_custom_call.1
= control target key start
LH: loop header
LB: loop body
LE: loop exit
PB: predicated region body
PF: predicated region fallthrough
CT: control target
= control target key end

     0   :  { %vm35_vm0 = vcmask 261120   ;;  %v312_v2 = vmov 0.0|0.0   ;;  %vm313_vm2 = vmmov 0   ;;  %v314_v5 = vmov 0.0   ;;  %s425_s0 = inlined_call_operand.vmem [shape: f32[128,32], index: 0, kind: input, shape index: {}]   ;;  %s426_s1 = inlined_call_operand.vmem [shape: f32[1,32], index: 1, kind: input, shape index: {}]   ;;  %s427_s2 = inlined_call_operand.<no memory space> [shape: f32[1], index: 2, kind: input, shape index: {}]   ;;  %s428_s3 = inlined_call_operand.hbm [shape: f32[1,128], index: 3, kind: output, shape index: {}]  }
   0x1   :  { %v17_v0 = vld [vmem:[%s425_s0] sm:$0xff]  ;;  %v18_v1 = vld [vmem:[%s425_s0 + $0x8] sm:$0xff]  ;;  %248 = vmatprep.subr.bf16.mxu0 %v312_v2  ;;  %vm344_vm1 = vmpackc.low %vm35_vm0, %vm35_vm0  ;;  %245 = vmatprep.mubr.msk.f32.mxu0 %vm313_vm2, %v314_v5 }
   0x2   :  { %v249_v3 = vpack.c.bf16 %v18_v1, %v17_v0  ;;  %v19_v6 = vld [vmem:[%s425_s0 + $0x10] sm:$0xff]  ;;  %v20_v7 = vld [vmem:[%s425_s0 + $0x18] sm:$0xff] }
   0x4   :  { %251 = vmatpush3.bf16.xpose.msk.msra.mxu0 %vm344_vm1, %v249_v3 }
   0x5   :  { %252 = vmatprep.subr.bf16.mxu0 %v312_v2 }
   0x6   :  { %9 = vsyncpa [#allocation4], 0  ;;  %v253_v8 = vpack.c.bf16 %v20_v7, %v19_v6  ;;  %v21_v9 = vld [vmem:[%s425_s0 + $0x20] sm:$0xff]  ;;  %v22_v10 = vld [vmem:[%s425_s0 + $0x28] sm:$0xff]  ;;  %v34_v28 = vstv %s427_s2 }
   0x7   :  { %v257_v11 = vpack.c.bf16 %v22_v10, %v21_v9  ;;  %v23_v12 = vld [vmem:[%s425_s0 + $0x30] sm:$0xff]  ;;  %v24_v13 = vld [vmem:[%s425_s0 + $0x38] sm:$0xff]  ;;  %v25_v15 = vld [vmem:[%s425_s0 + $0x40] sm:$0xff] }
   0x8   :  { %v261_v14 = vpack.c.bf16 %v24_v13, %v23_v12  ;;  %v26_v16 = vld [vmem:[%s425_s0 + $0x48] sm:$0xff]  ;;  %v27_v18 = vld [vmem:[%s425_s0 + $0x50] sm:$0xff]  ;;  %v28_v19 = vld [vmem:[%s425_s0 + $0x58] sm:$0xff] }
   0x9   :  { %v265_v17 = vpack.c.bf16 %v26_v16, %v25_v15  ;;  %v269_v20 = vpack.c.bf16 %v28_v19, %v27_v18  ;;  %v29_v21 = vld [vmem:[%s425_s0 + $0x60] sm:$0xff]  ;;  %v30_v22 = vld [vmem:[%s425_s0 + $0x68] sm:$0xff]  ;;  %v31_v24 = vld [vmem:[%s425_s0 + $0x70] sm:$0xff] }
   0xa   :  { %v273_v23 = vpack.c.bf16 %v30_v22, %v29_v21  ;;  %v32_v25 = vld [vmem:[%s425_s0 + $0x78] sm:$0xff]  ;;  %v16_v27 = vld [vmem:[%s426_s1] sm:$0x1]  ;;  %s315_s0 = smov [#allocation3]  }
   0xb   :  { %v277_v26 = vpack.c.bf16 %v32_v25, %v31_v24  ;;  %s170_s21 = sshll.u32 %s315_s0, 4  ;;  %s171_s21 = int_to_ptr.vmem [resolvable:$true] %s170_s21 }
   0xc   :  { %255 = vmatpush3.bf16.xpose.msk.msra.mxu0 %vm344_vm1, %v253_v8  ;;  %s288_s1 = scalar_lea.vmem %s171_s21, 16  ;;  %s292_s22 = scalar_lea.vmem %s171_s21, 32 }
   0xd   :  { %256 = vmatprep.subr.bf16.mxu0 %v312_v2  ;;  %p289_p0 = scmp.ne.s32.totalorder %s171_s21, %s288_s1  ;;  %p293_p1 = scmp.lt.s32.totalorder %s171_s21, %s171_s21 }
   0xe   :  { %p294_p2 = scmp.lt.s32.totalorder %s292_s22, %s288_s1 }
  0x10   :  { %p295_p3 = por %p294_p2, %p293_p1 }
  0x12   :  { %p296_p4 = pnand %p295_p3, %p289_p0 }
  0x14   :  { %259 = vmatpush3.bf16.xpose.msk.msra.mxu0 %vm344_vm1, %v257_v11 }
  0x15   :  { %260 = vmatprep.subr.bf16.mxu0 %v312_v2 }
  0x1c   :  { %263 = vmatpush3.bf16.xpose.msk.msra.mxu0 %vm344_vm1, %v261_v14 }
  0x1d   :  { %264 = vmatprep.subr.bf16.mxu0 %v312_v2 }
  0x24   :  { %267 = vmatpush3.bf16.xpose.msk.msra.mxu0 %vm344_vm1, %v265_v17 }
  0x25   :  { %268 = vmatprep.subr.bf16.mxu0 %v312_v2 }
  0x2c   :  { %271 = vmatpush3.bf16.xpose.msk.msra.mxu0 %vm344_vm1, %v269_v20 }
  0x2d   :  { %272 = vmatprep.subr.bf16.mxu0 %v312_v2 }
  0x34   :  { %275 = vmatpush3.bf16.xpose.msk.msra.mxu0 %vm344_vm1, %v273_v23 }
  0x35   :  { %276 = vmatprep.subr.bf16.mxu0 %v312_v2 }
  0x3c   :  { %279 = vmatpush3.bf16.xpose.msk.msra.mxu0 %vm344_vm1, %v277_v26 }
  0x43   :  { %246 = vmatmul.mubr.msk.f32.vlgmr.msra.gmra.mrb[0].mxu0 %vm35_vm0, %v16_v27 }
 0x116   :  { %v153_v29 = vpop.f32.mrb[0].mxu0 }
 0x117   :  { %v154_v30 = vadd.f32 %v153_v29, %v34_v28  ;;  %v247_v31 = vpop.f32.mrb[1].mxu0 }
 0x119   :  { %v195_v32 = vmul.f32 -1.442695, %v154_v30 }
 0x11b   :  { %284 = vpow2.f32 %v195_v32 }
 0x125   :  { %v285_v33 = vpop.eup %284 }
 0x126   :  { %v160_v34 = vadd.f32 1.0, %v285_v33 }
 0x128   :  { %286 = vrcp.f32 %v160_v34 }
 0x132   :  { %v287_v35 = vpop.eup %286 }
 0x133   :  { %163 = vst [vmem:[#allocation3] sm:$0x1] %v287_v35 }
 0x134   :  { %299 = shalt.err (!%p296_p4)
}
 0x135   :  { %s300_s24 = scalar_lea.hbm %s428_s3, 16 }
 0x136   :  { %p301_p5 = scmp.ne.s32.totalorder %s428_s3, %s300_s24  ;;  %p304_p6 = scmp.lt.u32.totalorder %s300_s24, %s428_s3 }
 0x138   :  { %p306_p7 = pnand %p304_p6, %p301_p5 }
 0x13a   :  { %309 = shalt.err (!%p306_p7)
}
 0x13b   :  { %173 = dma.vmem_to_hbm [thread:$0]  %s171_s21, 16, %s428_s3, [#allocation4]  }
 0x13c   :  { %310 = dma.done.wait [#allocation4], 16  }
 0x13d   :  { %311 = vsyncadd [#allocation4], 4294967280 }
 0x13e   :  { %177 = vsyncpa [#allocation4], 1 }

</bundles_post_ra>
